<compile_context>
chip_gen: v5e
topology: v5e:2x2
jax: 0.10.0
libtpu: 0.0.40
codegen_flags: <defaults>
</compile_context>

<pallas_src>
import jax
import jax.numpy as jnp
from jax.experimental import pallas as pl
from jax.experimental.pallas import tpu as pltpu


def _proto_kernel(x_ref, w0t_ref, b0_ref, wgt_ref, asrc_w_ref, adst_w_ref,
                  bias_ref, out_ref):
    """One grid step = `bt` batch elements (each a fully-connected N-node graph).

    x_ref     : (bt, N, Din)  input block
    w0t_ref   : (Din, F)      linear weight, transposed
    b0_ref    : (1, F)        linear bias
    wgt_ref   : (F, H*F)      GAT projection weight, transposed (all heads)
    asrc_w_ref: (F, H)        pre-folded att_src vectors  (Wg_h @ att_src[h])
    adst_w_ref: (F, H)        pre-folded att_dst vectors  (Wg_h @ att_dst[h])
    bias_ref  : (1, F)        GAT output bias
    out_ref   : (bt, N, F)    output block
    """
    bt, n, din = x_ref.shape
    fea = b0_ref.shape[1]
    n_heads = asrc_w_ref.shape[1]

    # --- LazyLinear(fea_dim), all bt*N rows at once ---
    x2d = x_ref[...].reshape(bt * n, din)                       # (rows, Din)
    h = jnp.dot(x2d, w0t_ref[...], preferred_element_type=jnp.float32)
    h = h + b0_ref[...]                                         # (rows, F)

    # --- GAT: one wide projection matmul for all heads ---
    g_all = jnp.dot(h, wgt_ref[...],
                    preferred_element_type=jnp.float32)         # (rows, H*F)
    # attention-logit halves: two tiny matmuls instead of 2*H lane reductions
    a_src = jnp.dot(h, asrc_w_ref[...],
                    preferred_element_type=jnp.float32)         # (rows, H)
    a_dst = jnp.dot(h, adst_w_ref[...],
                    preferred_element_type=jnp.float32)         # (rows, H)

    inv_heads = 1.0 / n_heads
    for b in range(bt):                                         # bt is small & static
        r0 = b * n
        g_b = g_all[r0:r0 + n, :]                               # (N, H*F)
        adst_b = a_dst[r0:r0 + n, :]                            # (N, H)
        # single transpose per batch element (instead of one per head)
        asrc_t = jnp.transpose(a_src[r0:r0 + n, :], (1, 0))     # (H, N)

        acc = jnp.zeros((n, fea), jnp.float32)
        for hh in range(n_heads):
            # e[i, j] = a_dst[i] + a_src[j]
            e = adst_b[:, hh:hh + 1] + asrc_t[hh:hh + 1, :]     # (N, N)
            # leaky_relu, negative_slope = 0.2 (GATConv default)
            e = jnp.where(e >= 0, e, 0.2 * e)
            # softmax over all N neighbours (self-loop included once)
            e = e - jnp.max(e, axis=-1, keepdims=True)
            p = jnp.exp(e)
            p = p * pl.reciprocal(jnp.sum(p, axis=-1, keepdims=True),
                                  approx=True)
            # TODO(synk): attention dropout (p=0.2) only applies in training.
            acc = acc + jnp.dot(p, g_b[:, hh * fea:(hh + 1) * fea],
                                preferred_element_type=jnp.float32)

        proto = acc * inv_heads + bias_ref[...]                 # mean over heads + bias
        out_ref[b] = proto.astype(out_ref.dtype)


def modality_proto_generator(x, w0, b0, wg, att_src, att_dst, bias_g,
                             batch_tile=None):
    """x: (B, N, Din). Returns proto: (B, N, F).

    Parameter shapes follow the PyTorch module:
      w0: (F, Din), b0: (F,)                       -- nn.LazyLinear(F)
      wg: (H*F, F), att_src/att_dst: (H, F), bias_g: (F,)
                                                   -- GATConv(F, F, heads=H, concat=False)
    """
    B, N, Din = x.shape
    F = w0.shape[0]
    H = att_src.shape[0]

    if batch_tile is None:
        # Keep >= 2 grid steps when B >= 2 so v7x's two TensorCores both get
        # work; otherwise pack everything into one step (fewer grid overheads).
        batch_tile = max(1, B // 2) if B >= 2 else 1
        while B % batch_tile:
            batch_tile -= 1
    assert B % batch_tile == 0, "batch_tile must divide B"
    grid_b = B // batch_tile

    # ---- parameter layout glue (plain JAX, runs once outside the kernel) ----
    w0t = jnp.transpose(w0, (1, 0))                 # (Din, F)
    b0_2d = b0.reshape(1, F)                        # (1, F)
    wgt = jnp.transpose(wg, (1, 0))                 # (F, H*F)
    bias_2d = bias_g.reshape(1, F)                  # (1, F)
    # Fold the attention vectors through the per-head projection:
    #   a_src[n, h] = (h[n] @ Wg_h) . att_src[h] = h[n] @ (Wg_h @ att_src[h])
    wg3 = wgt.reshape(F, H, F)                      # [k, h, f]
    asrc_w = jnp.einsum('khf,hf->kh', wg3, att_src) # (F, H)
    adst_w = jnp.einsum('khf,hf->kh', wg3, att_dst) # (F, H)

    out = pl.pallas_call(
        _proto_kernel,
        out_shape=jax.ShapeDtypeStruct((B, N, F), x.dtype),
        grid_spec=pltpu.PrefetchScalarGridSpec(
            num_scalar_prefetch=0,
            grid=(grid_b,),
            in_specs=[
                pl.BlockSpec((batch_tile, N, Din), lambda i: (i, 0, 0)),  # x
                pl.BlockSpec((Din, F), lambda i: (0, 0)),                 # w0^T
                pl.BlockSpec((1, F), lambda i: (0, 0)),                   # b0
                pl.BlockSpec((F, H * F), lambda i: (0, 0)),               # wg^T
                pl.BlockSpec((F, H), lambda i: (0, 0)),                   # folded att_src
                pl.BlockSpec((F, H), lambda i: (0, 0)),                   # folded att_dst
                pl.BlockSpec((1, F), lambda i: (0, 0)),                   # gat bias
            ],
            out_specs=pl.BlockSpec((batch_tile, N, F), lambda i: (i, 0, 0)),
        ),
        compiler_params=pltpu.CompilerParams(
            dimension_semantics=("parallel",)),
    )(x, w0t, b0_2d, wgt, asrc_w, adst_w, bias_2d)
    return out


def _reference(x, w0, b0, wg, att_src, att_dst, bias_g):
    """Pure-JAX reference (PyG GATConv inference semantics, fully connected)."""
    B, N, Din = x.shape
    F = w0.shape[0]
    H = att_src.shape[0]
    h = jnp.einsum('bnd,fd->bnf', x, w0) + b0                       # (B, N, F)
    g = jnp.einsum('bnf,of->bno', h, wg).reshape(B, N, H, F)        # (B, N, H, F)
    a_src = jnp.einsum('bnhf,hf->bnh', g, att_src)                  # (B, N, H)
    a_dst = jnp.einsum('bnhf,hf->bnh', g, att_dst)                  # (B, N, H)
    e = a_dst[:, :, None, :] + a_src[:, None, :, :]                 # (B, i, j, H)
    e = jnp.where(e >= 0, e, 0.2 * e)
    e = e - jnp.max(e, axis=2, keepdims=True)
    p = jnp.exp(e)
    p = p / jnp.sum(p, axis=2, keepdims=True)
    out = jnp.einsum('bijh,bjhf->bihf', p, g)                       # (B, N, H, F)
    return out.mean(axis=2) + bias_g


if __name__ == "__main__":
    # Small shapes consistent with the forward: batch=2, num_nodes=8,
    # input feature dim=48 (LazyLinear infers it), fea_dim=32, heads=8.
    B, N, Din, F, H = 2, 8, 48, 32, 8
    key = jax.random.PRNGKey(0)
    ks = jax.random.split(key, 7)

    x = jax.random.normal(ks[0], (B, N, Din), jnp.float32)

    # Deterministic synthetic parameters (shapes match the PyTorch module).
    w0 = jax.random.normal(ks[1], (F, Din), jnp.float32) * 0.1
    b0 = jax.random.normal(ks[2], (F,), jnp.float32) * 0.1
    wg = jax.random.normal(ks[3], (H * F, F), jnp.float32) * 0.1
    att_src = jax.random.normal(ks[4], (H, F), jnp.float32) * 0.1
    att_dst = jax.random.normal(ks[5], (H, F), jnp.float32) * 0.1
    bias_g = jax.random.normal(ks[6], (F,), jnp.float32) * 0.1

    proto = modality_proto_generator(x, w0, b0, wg, att_src, att_dst, bias_g)
    jax.block_until_ready(proto)
    assert proto.shape == (B, N, F)

    # Correctness check vs. pure-JAX reference (tolerance covers the
    # approx-reciprocal softmax denominator, ~1e-3 relative).
    ref = _reference(x, w0, b0, wg, att_src, att_dst, bias_g)
    assert bool(jnp.allclose(proto, ref, rtol=2e-2, atol=2e-2))

    print("KERNEL_OK")
</pallas_src>

<mosaic_0001>
module attributes {stable_mosaic.version = 11 : i64} {
  func.func @_proto_kernel(%arg0: i32, %arg1: memref<1x8x48xf32, #tpu.memory_space<vmem>>, %arg2: memref<48x32xf32, #tpu.memory_space<vmem>>, %arg3: memref<1x32xf32, #tpu.memory_space<vmem>>, %arg4: memref<32x256xf32, #tpu.memory_space<vmem>>, %arg5: memref<32x8xf32, #tpu.memory_space<vmem>>, %arg6: memref<32x8xf32, #tpu.memory_space<vmem>>, %arg7: memref<1x32xf32, #tpu.memory_space<vmem>>, %arg8: memref<1x8x32xf32, #tpu.memory_space<vmem>>) attributes {dimension_semantics = [#tpu.dimension_semantics<parallel>], iteration_bounds = array<i64: 2>, scalar_prefetch = 0 : i64, scratch_operands = 0 : i64, tpu.core_type = #tpu.core_type<tc>, window_params = [{transform_indices = @transform_0, window_bounds = array<i64: 1, 8, 48>}, {pipeline_mode = #tpu.pipeline_mode<synchronous>, transform_indices = @transform_1, window_bounds = array<i64: 48, 32>}, {pipeline_mode = #tpu.pipeline_mode<synchronous>, transform_indices = @transform_2, window_bounds = array<i64: 1, 32>}, {pipeline_mode = #tpu.pipeline_mode<synchronous>, transform_indices = @transform_3, window_bounds = array<i64: 32, 256>}, {pipeline_mode = #tpu.pipeline_mode<synchronous>, transform_indices = @transform_4, window_bounds = array<i64: 32, 8>}, {pipeline_mode = #tpu.pipeline_mode<synchronous>, transform_indices = @transform_5, window_bounds = array<i64: 32, 8>}, {pipeline_mode = #tpu.pipeline_mode<synchronous>, transform_indices = @transform_6, window_bounds = array<i64: 1, 32>}, {transform_indices = @transform_7, window_bounds = array<i64: 1, 8, 32>}]} {
    %c0 = arith.constant 0 : index
    %c0_0 = arith.constant 0 : index
    %c0_1 = arith.constant 0 : index
    %0 = vector.load %arg1[%c0, %c0_0, %c0_1] : memref<1x8x48xf32, #tpu.memory_space<vmem>>, vector<1x8x48xf32>
    %1 = vector.shape_cast %0 : vector<1x8x48xf32> to vector<8x48xf32>
    %c0_2 = arith.constant 0 : index
    %c0_3 = arith.constant 0 : index
    %2 = vector.load %arg2[%c0_2, %c0_3] : memref<48x32xf32, #tpu.memory_space<vmem>>, vector<48x32xf32>
    %cst = arith.constant dense<0.000000e+00> : vector<8x32xf32>
    %3 = tpu.matmul %1, %2, %cst {dimension_numbers = #tpu.dot_dimension_numbers<[1], [0], [0], [1], [0, 0, 1, 1], [], []>} : vector<8x48xf32>, vector<48x32xf32>, vector<8x32xf32> -> vector<8x32xf32>
    %c0_4 = arith.constant 0 : index
    %c0_5 = arith.constant 0 : index
    %4 = vector.load %arg3[%c0_4, %c0_5] : memref<1x32xf32, #tpu.memory_space<vmem>>, vector<1x32xf32>
    %5 = vector.broadcast %4 : vector<1x32xf32> to vector<8x32xf32>
    %6 = arith.addf %3, %5 : vector<8x32xf32>
    %c0_6 = arith.constant 0 : index
    %c0_7 = arith.constant 0 : index
    %7 = vector.load %arg4[%c0_6, %c0_7] : memref<32x256xf32, #tpu.memory_space<vmem>>, vector<32x256xf32>
    %cst_8 = arith.constant dense<0.000000e+00> : vector<8x256xf32>
    %8 = tpu.matmul %6, %7, %cst_8 {dimension_numbers = #tpu.dot_dimension_numbers<[1], [0], [0], [1], [0, 0, 1, 1], [], []>} : vector<8x32xf32>, vector<32x256xf32>, vector<8x256xf32> -> vector<8x256xf32>
    %c0_9 = arith.constant 0 : index
    %c0_10 = arith.constant 0 : index
    %9 = vector.load %arg5[%c0_9, %c0_10] : memref<32x8xf32, #tpu.memory_space<vmem>>, vector<32x8xf32>
    %cst_11 = arith.constant dense<0.000000e+00> : vector<8x8xf32>
    %10 = tpu.matmul %6, %9, %cst_11 {dimension_numbers = #tpu.dot_dimension_numbers<[1], [0], [0], [1], [0, 0, 1, 1], [], []>} : vector<8x32xf32>, vector<32x8xf32>, vector<8x8xf32> -> vector<8x8xf32>
    %c0_12 = arith.constant 0 : index
    %c0_13 = arith.constant 0 : index
    %11 = vector.load %arg6[%c0_12, %c0_13] : memref<32x8xf32, #tpu.memory_space<vmem>>, vector<32x8xf32>
    %cst_14 = arith.constant dense<0.000000e+00> : vector<8x8xf32>
    %12 = tpu.matmul %6, %11, %cst_14 {dimension_numbers = #tpu.dot_dimension_numbers<[1], [0], [0], [1], [0, 0, 1, 1], [], []>} : vector<8x32xf32>, vector<32x8xf32>, vector<8x8xf32> -> vector<8x8xf32>
    %13 = tpu.transpose %10, [1, 0] : vector<8x8xf32> -> vector<8x8xf32>
    %cst_15 = arith.constant 0.000000e+00 : f32
    %14 = vector.broadcast %cst_15 : f32 to vector<8x32xf32>
    %15 = vector.extract_strided_slice %12 {offsets = [0, 0], sizes = [8, 1], strides = [1, 1]} : vector<8x8xf32> to vector<8x1xf32>
    %16 = vector.extract_strided_slice %13 {offsets = [0, 0], sizes = [1, 8], strides = [1, 1]} : vector<8x8xf32> to vector<1x8xf32>
    %17 = vector.broadcast %15 : vector<8x1xf32> to vector<8x8xf32>
    %18 = vector.broadcast %16 : vector<1x8xf32> to vector<8x8xf32>
    %19 = arith.addf %17, %18 : vector<8x8xf32>
    %cst_16 = arith.constant 0.000000e+00 : f32
    %20 = vector.broadcast %cst_16 : f32 to vector<8x8xf32>
    %21 = arith.cmpf oge, %19, %20 : vector<8x8xf32>
    %cst_17 = arith.constant 2.000000e-01 : f32
    %22 = vector.broadcast %cst_17 : f32 to vector<8x8xf32>
    %23 = arith.mulf %22, %19 : vector<8x8xf32>
    %24 = arith.select %21, %19, %23 : vector<8x8xi1>, vector<8x8xf32>
    %cst_18 = arith.constant dense<0xFF800000> : vector<8xf32>
    %25 = vector.multi_reduction <maximumf>, %24, %cst_18 [1] : vector<8x8xf32> to vector<8xf32>
    %26 = vector.shape_cast %25 : vector<8xf32> to vector<8x1xf32>
    %27 = vector.broadcast %26 : vector<8x1xf32> to vector<8x8xf32>
    %28 = arith.subf %24, %27 : vector<8x8xf32>
    %29 = math.exp %28 : vector<8x8xf32>
    %cst_19 = arith.constant dense<0.000000e+00> : vector<8xf32>
    %30 = vector.multi_reduction <add>, %29, %cst_19 [1] : vector<8x8xf32> to vector<8xf32>
    %31 = vector.shape_cast %30 : vector<8xf32> to vector<8x1xf32>
    %32 = tpu.reciprocal %31 {approx = true} : vector<8x1xf32> -> vector<8x1xf32>
    %33 = vector.broadcast %32 : vector<8x1xf32> to vector<8x8xf32>
    %34 = arith.mulf %29, %33 : vector<8x8xf32>
    %35 = vector.extract_strided_slice %8 {offsets = [0, 0], sizes = [8, 32], strides = [1, 1]} : vector<8x256xf32> to vector<8x32xf32>
    %cst_20 = arith.constant dense<0.000000e+00> : vector<8x32xf32>
    %36 = tpu.matmul %34, %35, %cst_20 {dimension_numbers = #tpu.dot_dimension_numbers<[1], [0], [0], [1], [0, 0, 1, 1], [], []>} : vector<8x8xf32>, vector<8x32xf32>, vector<8x32xf32> -> vector<8x32xf32>
    %37 = arith.addf %14, %36 : vector<8x32xf32>
    %38 = vector.extract_strided_slice %12 {offsets = [0, 1], sizes = [8, 1], strides = [1, 1]} : vector<8x8xf32> to vector<8x1xf32>
    %39 = vector.extract_strided_slice %13 {offsets = [1, 0], sizes = [1, 8], strides = [1, 1]} : vector<8x8xf32> to vector<1x8xf32>
    %40 = vector.broadcast %38 : vector<8x1xf32> to vector<8x8xf32>
    %41 = vector.broadcast %39 : vector<1x8xf32> to vector<8x8xf32>
    %42 = arith.addf %40, %41 : vector<8x8xf32>
    %cst_21 = arith.constant 0.000000e+00 : f32
    %43 = vector.broadcast %cst_21 : f32 to vector<8x8xf32>
    %44 = arith.cmpf oge, %42, %43 : vector<8x8xf32>
    %cst_22 = arith.constant 2.000000e-01 : f32
    %45 = vector.broadcast %cst_22 : f32 to vector<8x8xf32>
    %46 = arith.mulf %45, %42 : vector<8x8xf32>
    %47 = arith.select %44, %42, %46 : vector<8x8xi1>, vector<8x8xf32>
    %cst_23 = arith.constant dense<0xFF800000> : vector<8xf32>
    %48 = vector.multi_reduction <maximumf>, %47, %cst_23 [1] : vector<8x8xf32> to vector<8xf32>
    %49 = vector.shape_cast %48 : vector<8xf32> to vector<8x1xf32>
    %50 = vector.broadcast %49 : vector<8x1xf32> to vector<8x8xf32>
    %51 = arith.subf %47, %50 : vector<8x8xf32>
    %52 = math.exp %51 : vector<8x8xf32>
    %cst_24 = arith.constant dense<0.000000e+00> : vector<8xf32>
    %53 = vector.multi_reduction <add>, %52, %cst_24 [1] : vector<8x8xf32> to vector<8xf32>
    %54 = vector.shape_cast %53 : vector<8xf32> to vector<8x1xf32>
    %55 = tpu.reciprocal %54 {approx = true} : vector<8x1xf32> -> vector<8x1xf32>
    %56 = vector.broadcast %55 : vector<8x1xf32> to vector<8x8xf32>
    %57 = arith.mulf %52, %56 : vector<8x8xf32>
    %58 = vector.extract_strided_slice %8 {offsets = [0, 32], sizes = [8, 32], strides = [1, 1]} : vector<8x256xf32> to vector<8x32xf32>
    %cst_25 = arith.constant dense<0.000000e+00> : vector<8x32xf32>
    %59 = tpu.matmul %57, %58, %cst_25 {dimension_numbers = #tpu.dot_dimension_numbers<[1], [0], [0], [1], [0, 0, 1, 1], [], []>} : vector<8x8xf32>, vector<8x32xf32>, vector<8x32xf32> -> vector<8x32xf32>
    %60 = arith.addf %37, %59 : vector<8x32xf32>
    %61 = vector.extract_strided_slice %12 {offsets = [0, 2], sizes = [8, 1], strides = [1, 1]} : vector<8x8xf32> to vector<8x1xf32>
    %62 = vector.extract_strided_slice %13 {offsets = [2, 0], sizes = [1, 8], strides = [1, 1]} : vector<8x8xf32> to vector<1x8xf32>
    %63 = vector.broadcast %61 : vector<8x1xf32> to vector<8x8xf32>
    %64 = vector.broadcast %62 : vector<1x8xf32> to vector<8x8xf32>
    %65 = arith.addf %63, %64 : vector<8x8xf32>
    %cst_26 = arith.constant 0.000000e+00 : f32
    %66 = vector.broadcast %cst_26 : f32 to vector<8x8xf32>
    %67 = arith.cmpf oge, %65, %66 : vector<8x8xf32>
    %cst_27 = arith.constant 2.000000e-01 : f32
    %68 = vector.broadcast %cst_27 : f32 to vector<8x8xf32>
    %69 = arith.mulf %68, %65 : vector<8x8xf32>
    %70 = arith.select %67, %65, %69 : vector<8x8xi1>, vector<8x8xf32>
    %cst_28 = arith.constant dense<0xFF800000> : vector<8xf32>
    %71 = vector.multi_reduction <maximumf>, %70, %cst_28 [1] : vector<8x8xf32> to vector<8xf32>
    %72 = vector.shape_cast %71 : vector<8xf32> to vector<8x1xf32>
    %73 = vector.broadcast %72 : vector<8x1xf32> to vector<8x8xf32>
    %74 = arith.subf %70, %73 : vector<8x8xf32>
    %75 = math.exp %74 : vector<8x8xf32>
    %cst_29 = arith.constant dense<0.000000e+00> : vector<8xf32>
    %76 = vector.multi_reduction <add>, %75, %cst_29 [1] : vector<8x8xf32> to vector<8xf32>
    %77 = vector.shape_cast %76 : vector<8xf32> to vector<8x1xf32>
    %78 = tpu.reciprocal %77 {approx = true} : vector<8x1xf32> -> vector<8x1xf32>
    %79 = vector.broadcast %78 : vector<8x1xf32> to vector<8x8xf32>
    %80 = arith.mulf %75, %79 : vector<8x8xf32>
    %81 = vector.extract_strided_slice %8 {offsets = [0, 64], sizes = [8, 32], strides = [1, 1]} : vector<8x256xf32> to vector<8x32xf32>
    %cst_30 = arith.constant dense<0.000000e+00> : vector<8x32xf32>
    %82 = tpu.matmul %80, %81, %cst_30 {dimension_numbers = #tpu.dot_dimension_numbers<[1], [0], [0], [1], [0, 0, 1, 1], [], []>} : vector<8x8xf32>, vector<8x32xf32>, vector<8x32xf32> -> vector<8x32xf32>
    %83 = arith.addf %60, %82 : vector<8x32xf32>
    %84 = vector.extract_strided_slice %12 {offsets = [0, 3], sizes = [8, 1], strides = [1, 1]} : vector<8x8xf32> to vector<8x1xf32>
    %85 = vector.extract_strided_slice %13 {offsets = [3, 0], sizes = [1, 8], strides = [1, 1]} : vector<8x8xf32> to vector<1x8xf32>
    %86 = vector.broadcast %84 : vector<8x1xf32> to vector<8x8xf32>
    %87 = vector.broadcast %85 : vector<1x8xf32> to vector<8x8xf32>
    %88 = arith.addf %86, %87 : vector<8x8xf32>
    %cst_31 = arith.constant 0.000000e+00 : f32
    %89 = vector.broadcast %cst_31 : f32 to vector<8x8xf32>
    %90 = arith.cmpf oge, %88, %89 : vector<8x8xf32>
    %cst_32 = arith.constant 2.000000e-01 : f32
    %91 = vector.broadcast %cst_32 : f32 to vector<8x8xf32>
    %92 = arith.mulf %91, %88 : vector<8x8xf32>
    %93 = arith.select %90, %88, %92 : vector<8x8xi1>, vector<8x8xf32>
    %cst_33 = arith.constant dense<0xFF800000> : vector<8xf32>
    %94 = vector.multi_reduction <maximumf>, %93, %cst_33 [1] : vector<8x8xf32> to vector<8xf32>
    %95 = vector.shape_cast %94 : vector<8xf32> to vector<8x1xf32>
    %96 = vector.broadcast %95 : vector<8x1xf32> to vector<8x8xf32>
    %97 = arith.subf %93, %96 : vector<8x8xf32>
    %98 = math.exp %97 : vector<8x8xf32>
    %cst_34 = arith.constant dense<0.000000e+00> : vector<8xf32>
    %99 = vector.multi_reduction <add>, %98, %cst_34 [1] : vector<8x8xf32> to vector<8xf32>
    %100 = vector.shape_cast %99 : vector<8xf32> to vector<8x1xf32>
    %101 = tpu.reciprocal %100 {approx = true} : vector<8x1xf32> -> vector<8x1xf32>
    %102 = vector.broadcast %101 : vector<8x1xf32> to vector<8x8xf32>
    %103 = arith.mulf %98, %102 : vector<8x8xf32>
    %104 = vector.extract_strided_slice %8 {offsets = [0, 96], sizes = [8, 32], strides = [1, 1]} : vector<8x256xf32> to vector<8x32xf32>
    %cst_35 = arith.constant dense<0.000000e+00> : vector<8x32xf32>
    %105 = tpu.matmul %103, %104, %cst_35 {dimension_numbers = #tpu.dot_dimension_numbers<[1], [0], [0], [1], [0, 0, 1, 1], [], []>} : vector<8x8xf32>, vector<8x32xf32>, vector<8x32xf32> -> vector<8x32xf32>
    %106 = arith.addf %83, %105 : vector<8x32xf32>
    %107 = vector.extract_strided_slice %12 {offsets = [0, 4], sizes = [8, 1], strides = [1, 1]} : vector<8x8xf32> to vector<8x1xf32>
    %108 = vector.extract_strided_slice %13 {offsets = [4, 0], sizes = [1, 8], strides = [1, 1]} : vector<8x8xf32> to vector<1x8xf32>
    %109 = vector.broadcast %107 : vector<8x1xf32> to vector<8x8xf32>
    %110 = vector.broadcast %108 : vector<1x8xf32> to vector<8x8xf32>
    %111 = arith.addf %109, %110 : vector<8x8xf32>
    %cst_36 = arith.constant 0.000000e+00 : f32
    %112 = vector.broadcast %cst_36 : f32 to vector<8x8xf32>
    %113 = arith.cmpf oge, %111, %112 : vector<8x8xf32>
    %cst_37 = arith.constant 2.000000e-01 : f32
    %114 = vector.broadcast %cst_37 : f32 to vector<8x8xf32>
    %115 = arith.mulf %114, %111 : vector<8x8xf32>
    %116 = arith.select %113, %111, %115 : vector<8x8xi1>, vector<8x8xf32>
    %cst_38 = arith.constant dense<0xFF800000> : vector<8xf32>
    %117 = vector.multi_reduction <maximumf>, %116, %cst_38 [1] : vector<8x8xf32> to vector<8xf32>
    %118 = vector.shape_cast %117 : vector<8xf32> to vector<8x1xf32>
    %119 = vector.broadcast %118 : vector<8x1xf32> to vector<8x8xf32>
    %120 = arith.subf %116, %119 : vector<8x8xf32>
    %121 = math.exp %120 : vector<8x8xf32>
    %cst_39 = arith.constant dense<0.000000e+00> : vector<8xf32>
    %122 = vector.multi_reduction <add>, %121, %cst_39 [1] : vector<8x8xf32> to vector<8xf32>
    %123 = vector.shape_cast %122 : vector<8xf32> to vector<8x1xf32>
    %124 = tpu.reciprocal %123 {approx = true} : vector<8x1xf32> -> vector<8x1xf32>
    %125 = vector.broadcast %124 : vector<8x1xf32> to vector<8x8xf32>
    %126 = arith.mulf %121, %125 : vector<8x8xf32>
    %127 = vector.extract_strided_slice %8 {offsets = [0, 128], sizes = [8, 32], strides = [1, 1]} : vector<8x256xf32> to vector<8x32xf32>
    %cst_40 = arith.constant dense<0.000000e+00> : vector<8x32xf32>
    %128 = tpu.matmul %126, %127, %cst_40 {dimension_numbers = #tpu.dot_dimension_numbers<[1], [0], [0], [1], [0, 0, 1, 1], [], []>} : vector<8x8xf32>, vector<8x32xf32>, vector<8x32xf32> -> vector<8x32xf32>
    %129 = arith.addf %106, %128 : vector<8x32xf32>
    %130 = vector.extract_strided_slice %12 {offsets = [0, 5], sizes = [8, 1], strides = [1, 1]} : vector<8x8xf32> to vector<8x1xf32>
    %131 = vector.extract_strided_slice %13 {offsets = [5, 0], sizes = [1, 8], strides = [1, 1]} : vector<8x8xf32> to vector<1x8xf32>
    %132 = vector.broadcast %130 : vector<8x1xf32> to vector<8x8xf32>
    %133 = vector.broadcast %131 : vector<1x8xf32> to vector<8x8xf32>
    %134 = arith.addf %132, %133 : vector<8x8xf32>
    %cst_41 = arith.constant 0.000000e+00 : f32
    %135 = vector.broadcast %cst_41 : f32 to vector<8x8xf32>
    %136 = arith.cmpf oge, %134, %135 : vector<8x8xf32>
    %cst_42 = arith.constant 2.000000e-01 : f32
    %137 = vector.broadcast %cst_42 : f32 to vector<8x8xf32>
    %138 = arith.mulf %137, %134 : vector<8x8xf32>
    %139 = arith.select %136, %134, %138 : vector<8x8xi1>, vector<8x8xf32>
    %cst_43 = arith.constant dense<0xFF800000> : vector<8xf32>
    %140 = vector.multi_reduction <maximumf>, %139, %cst_43 [1] : vector<8x8xf32> to vector<8xf32>
    %141 = vector.shape_cast %140 : vector<8xf32> to vector<8x1xf32>
    %142 = vector.broadcast %141 : vector<8x1xf32> to vector<8x8xf32>
    %143 = arith.subf %139, %142 : vector<8x8xf32>
    %144 = math.exp %143 : vector<8x8xf32>
    %cst_44 = arith.constant dense<0.000000e+00> : vector<8xf32>
    %145 = vector.multi_reduction <add>, %144, %cst_44 [1] : vector<8x8xf32> to vector<8xf32>
    %146 = vector.shape_cast %145 : vector<8xf32> to vector<8x1xf32>
    %147 = tpu.reciprocal %146 {approx = true} : vector<8x1xf32> -> vector<8x1xf32>
    %148 = vector.broadcast %147 : vector<8x1xf32> to vector<8x8xf32>
    %149 = arith.mulf %144, %148 : vector<8x8xf32>
    %150 = vector.extract_strided_slice %8 {offsets = [0, 160], sizes = [8, 32], strides = [1, 1]} : vector<8x256xf32> to vector<8x32xf32>
    %cst_45 = arith.constant dense<0.000000e+00> : vector<8x32xf32>
    %151 = tpu.matmul %149, %150, %cst_45 {dimension_numbers = #tpu.dot_dimension_numbers<[1], [0], [0], [1], [0, 0, 1, 1], [], []>} : vector<8x8xf32>, vector<8x32xf32>, vector<8x32xf32> -> vector<8x32xf32>
    %152 = arith.addf %129, %151 : vector<8x32xf32>
    %153 = vector.extract_strided_slice %12 {offsets = [0, 6], sizes = [8, 1], strides = [1, 1]} : vector<8x8xf32> to vector<8x1xf32>
    %154 = vector.extract_strided_slice %13 {offsets = [6, 0], sizes = [1, 8], strides = [1, 1]} : vector<8x8xf32> to vector<1x8xf32>
    %155 = vector.broadcast %153 : vector<8x1xf32> to vector<8x8xf32>
    %156 = vector.broadcast %154 : vector<1x8xf32> to vector<8x8xf32>
    %157 = arith.addf %155, %156 : vector<8x8xf32>
    %cst_46 = arith.constant 0.000000e+00 : f32
    %158 = vector.broadcast %cst_46 : f32 to vector<8x8xf32>
    %159 = arith.cmpf oge, %157, %158 : vector<8x8xf32>
    %cst_47 = arith.constant 2.000000e-01 : f32
    %160 = vector.broadcast %cst_47 : f32 to vector<8x8xf32>
    %161 = arith.mulf %160, %157 : vector<8x8xf32>
    %162 = arith.select %159, %157, %161 : vector<8x8xi1>, vector<8x8xf32>
    %cst_48 = arith.constant dense<0xFF800000> : vector<8xf32>
    %163 = vector.multi_reduction <maximumf>, %162, %cst_48 [1] : vector<8x8xf32> to vector<8xf32>
    %164 = vector.shape_cast %163 : vector<8xf32> to vector<8x1xf32>
    %165 = vector.broadcast %164 : vector<8x1xf32> to vector<8x8xf32>
    %166 = arith.subf %162, %165 : vector<8x8xf32>
    %167 = math.exp %166 : vector<8x8xf32>
    %cst_49 = arith.constant dense<0.000000e+00> : vector<8xf32>
    %168 = vector.multi_reduction <add>, %167, %cst_49 [1] : vector<8x8xf32> to vector<8xf32>
    %169 = vector.shape_cast %168 : vector<8xf32> to vector<8x1xf32>
    %170 = tpu.reciprocal %169 {approx = true} : vector<8x1xf32> -> vector<8x1xf32>
    %171 = vector.broadcast %170 : vector<8x1xf32> to vector<8x8xf32>
    %172 = arith.mulf %167, %171 : vector<8x8xf32>
    %173 = vector.extract_strided_slice %8 {offsets = [0, 192], sizes = [8, 32], strides = [1, 1]} : vector<8x256xf32> to vector<8x32xf32>
    %cst_50 = arith.constant dense<0.000000e+00> : vector<8x32xf32>
    %174 = tpu.matmul %172, %173, %cst_50 {dimension_numbers = #tpu.dot_dimension_numbers<[1], [0], [0], [1], [0, 0, 1, 1], [], []>} : vector<8x8xf32>, vector<8x32xf32>, vector<8x32xf32> -> vector<8x32xf32>
    %175 = arith.addf %152, %174 : vector<8x32xf32>
    %176 = vector.extract_strided_slice %12 {offsets = [0, 7], sizes = [8, 1], strides = [1, 1]} : vector<8x8xf32> to vector<8x1xf32>
    %177 = vector.extract_strided_slice %13 {offsets = [7, 0], sizes = [1, 8], strides = [1, 1]} : vector<8x8xf32> to vector<1x8xf32>
    %178 = vector.broadcast %176 : vector<8x1xf32> to vector<8x8xf32>
    %179 = vector.broadcast %177 : vector<1x8xf32> to vector<8x8xf32>
    %180 = arith.addf %178, %179 : vector<8x8xf32>
    %cst_51 = arith.constant 0.000000e+00 : f32
    %181 = vector.broadcast %cst_51 : f32 to vector<8x8xf32>
    %182 = arith.cmpf oge, %180, %181 : vector<8x8xf32>
    %cst_52 = arith.constant 2.000000e-01 : f32
    %183 = vector.broadcast %cst_52 : f32 to vector<8x8xf32>
    %184 = arith.mulf %183, %180 : vector<8x8xf32>
    %185 = arith.select %182, %180, %184 : vector<8x8xi1>, vector<8x8xf32>
    %cst_53 = arith.constant dense<0xFF800000> : vector<8xf32>
    %186 = vector.multi_reduction <maximumf>, %185, %cst_53 [1] : vector<8x8xf32> to vector<8xf32>
    %187 = vector.shape_cast %186 : vector<8xf32> to vector<8x1xf32>
    %188 = vector.broadcast %187 : vector<8x1xf32> to vector<8x8xf32>
    %189 = arith.subf %185, %188 : vector<8x8xf32>
    %190 = math.exp %189 : vector<8x8xf32>
    %cst_54 = arith.constant dense<0.000000e+00> : vector<8xf32>
    %191 = vector.multi_reduction <add>, %190, %cst_54 [1] : vector<8x8xf32> to vector<8xf32>
    %192 = vector.shape_cast %191 : vector<8xf32> to vector<8x1xf32>
    %193 = tpu.reciprocal %192 {approx = true} : vector<8x1xf32> -> vector<8x1xf32>
    %194 = vector.broadcast %193 : vector<8x1xf32> to vector<8x8xf32>
    %195 = arith.mulf %190, %194 : vector<8x8xf32>
    %196 = vector.extract_strided_slice %8 {offsets = [0, 224], sizes = [8, 32], strides = [1, 1]} : vector<8x256xf32> to vector<8x32xf32>
    %cst_55 = arith.constant dense<0.000000e+00> : vector<8x32xf32>
    %197 = tpu.matmul %195, %196, %cst_55 {dimension_numbers = #tpu.dot_dimension_numbers<[1], [0], [0], [1], [0, 0, 1, 1], [], []>} : vector<8x8xf32>, vector<8x32xf32>, vector<8x32xf32> -> vector<8x32xf32>
    %198 = arith.addf %175, %197 : vector<8x32xf32>
    %cst_56 = arith.constant 1.250000e-01 : f32
    %199 = vector.broadcast %cst_56 : f32 to vector<8x32xf32>
    %200 = arith.mulf %198, %199 : vector<8x32xf32>
    %c0_57 = arith.constant 0 : index
    %c0_58 = arith.constant 0 : index
    %201 = vector.load %arg7[%c0_57, %c0_58] : memref<1x32xf32, #tpu.memory_space<vmem>>, vector<1x32xf32>
    %202 = vector.broadcast %201 : vector<1x32xf32> to vector<8x32xf32>
    %203 = arith.addf %200, %202 : vector<8x32xf32>
    %c0_59 = arith.constant 0 : index
    %c0_60 = arith.constant 0 : index
    %c0_61 = arith.constant 0 : index
    %204 = vector.load %arg8[%c0_59, %c0_60, %c0_61] : memref<1x8x32xf32, #tpu.memory_space<vmem>>, vector<1x8x32xf32>
    %205 = vector.shape_cast %204 : vector<1x8x32xf32> to vector<8x32xf32>
    %206 = vector.shape_cast %203 : vector<8x32xf32> to vector<1x8x32xf32>
    tpu.vector_store %arg8[%c0_59, %c0_60, %c0_61], %206 {strides = array<i32>} : memref<1x8x32xf32, #tpu.memory_space<vmem>>, vector<1x8x32xf32>,
    return
  }
  func.func @transform_0(%arg0: i32) -> (i32, i32, i32) {
    %c0_i32 = arith.constant 0 : i32
    %c0_i32_0 = arith.constant 0 : i32
    %c0_i32_1 = arith.constant 0 : i32
    return %arg0, %c0_i32, %c0_i32_0 : i32, i32, i32
  }
  func.func @transform_1(%arg0: i32) -> (i32, i32) {
    %c0_i32 = arith.constant 0 : i32
    %c0_i32_0 = arith.constant 0 : i32
    %c0_i32_1 = arith.constant 0 : i32
    return %c0_i32, %c0_i32_0 : i32, i32
  }
  func.func @transform_2(%arg0: i32) -> (i32, i32) {
    %c0_i32 = arith.constant 0 : i32
    %c0_i32_0 = arith.constant 0 : i32
    %c0_i32_1 = arith.constant 0 : i32
    return %c0_i32, %c0_i32_0 : i32, i32
  }
  func.func @transform_3(%arg0: i32) -> (i32, i32) {
    %c0_i32 = arith.constant 0 : i32
    %c0_i32_0 = arith.constant 0 : i32
    %c0_i32_1 = arith.constant 0 : i32
    return %c0_i32, %c0_i32_0 : i32, i32
  }
  func.func @transform_4(%arg0: i32) -> (i32, i32) {
    %c0_i32 = arith.constant 0 : i32
    %c0_i32_0 = arith.constant 0 : i32
    %c0_i32_1 = arith.constant 0 : i32
    return %c0_i32, %c0_i32_0 : i32, i32
  }
  func.func @transform_5(%arg0: i32) -> (i32, i32) {
    %c0_i32 = arith.constant 0 : i32
    %c0_i32_0 = arith.constant 0 : i32
    %c0_i32_1 = arith.constant 0 : i32
    return %c0_i32, %c0_i32_0 : i32, i32
  }
  func.func @transform_6(%arg0: i32) -> (i32, i32) {
    %c0_i32 = arith.constant 0 : i32
    %c0_i32_0 = arith.constant 0 : i32
    %c0_i32_1 = arith.constant 0 : i32
    return %c0_i32, %c0_i32_0 : i32, i32
  }
  func.func @transform_7(%arg0: i32) -> (i32, i32, i32) {
    %c0_i32 = arith.constant 0 : i32
    %c0_i32_0 = arith.constant 0 : i32
    %c0_i32_1 = arith.constant 0 : i32
    return %arg0, %c0_i32, %c0_i32_0 : i32, i32, i32
  }
}

</mosaic_0001>

<bundles_post_ra>
// kernel: tpu_custom_call.1
= control target key start
LH: loop header
LB: loop body
LE: loop exit
PB: predicated region body
PF: predicated region fallthrough
CT: control target
= control target key end

     0   :  { %12 = vsyncpa [#allocation3], 0  ;;  %s1356_s0 = inlined_call_operand.vmem [shape: f32[2,8,48], index: 0, kind: input, shape index: {}]   ;;  %s1357_s1 = inlined_call_operand.vmem [shape: f32[48,32], index: 1, kind: input, shape index: {}]   ;;  %s1358_s2 = inlined_call_operand.vmem [shape: f32[1,32], index: 2, kind: input, shape index: {}]   ;;  %s1359_s3 = inlined_call_operand.vmem [shape: f32[32,256], index: 3, kind: input, shape index: {}]   ;;  %s1360_s4 = inlined_call_operand.vmem [shape: f32[32,8], index: 4, kind: input, shape index: {}]   ;;  %s1361_s5 = inlined_call_operand.vmem [shape: f32[32,8], index: 5, kind: input, shape index: {}]   ;;  %s1362_s6 = inlined_call_operand.vmem [shape: f32[1,32], index: 6, kind: input, shape index: {}]   ;;  %s1363_s7 = inlined_call_operand.hbm [shape: f32[2,8,32], index: 7, kind: output, shape index: {}]  }
   0x1   :  { %14 = vsyncpa [#allocation3 + $0x1], 0  ;;  %s1132_s24 = smov 0   ;;  %s1134_s25 = smov 0  }
   0x2   :  { %s1136_s26 = smov 0   ;;  %s1138_s27 = smov 0  }
   0x3 LB: > { %s1153_s28 = sadd.s32 4294967295, %s1079_s27   ;;  %s895_s29 = sadd.s32 4294967294, %s1079_s27   ;;  %s1079_s27 = sphi %s1138_s27, %s1369_s27   ;;  %s1075_s26 = sphi %s1136_s26, %s1368_s26   ;;  %s1071_s25 = sphi %s1134_s25, %s1367_s25   ;;  %s1067_s24 = sphi %s1132_s24, %s1366_s24  }
   0x4   : > { %s1157_s30 = sadd.s32 1, %s1079_s27   ;;  %s179_s8 = sadd.s32 1, %s1075_s26 }
   0x5   : > { %s176_s9 = ssub.s32 %s1079_s27, %s1157_s30  ;;  %p189_p0 = scmp.ne.s32.totalorder %s1075_s26, %s1071_s25 }
   0x6   : > { %p177_p1 = scmp.eq.s32.totalorder %s176_s9, 0  ;;  %p190_p2 = scmp.eq.s32.totalorder %s1153_s28, 1 }
   0x7   : > { %p195_p3 = scmp.ne.s32.totalorder %s1071_s25, %s1067_s24  ;;  %p196_p4 = scmp.eq.s32.totalorder %s895_s29, 1 }
   0x8   : > { %s1168_s10 = scalar_select %p177_p1, %s1075_s26, %s179_s8  }
   0x9   : > { %p1170_p5 = por %p190_p2, %p189_p0  ;;  %p1174_p6 = por %p196_p4, %p195_p3 }
   0xa   : > { %p898_p7 = scmp.ge.s32.totalorder %s1079_s27, 1  ;;  %p239_p8 = scmp.lt.s32.totalorder %s1079_s27, 3 }
   0xc   : > { %p240_p9 = pnand %p898_p7, %p239_p8 }
   0xd   : > { %p270_p10 = scmp.lt.s32.totalorder (!%p240_p9), %s1153_s28, 1  ;;  %s1089_s23 = smov (!%p240_p9), 64  }
   0xe   : > { %243 = sbr.rel (%p240_p9) target bundleno = 988 (0x3dc), region = 48  ;;  %s1090_s29 = smov (!%p240_p9), 96  }
   0xf   : > { %s1091_s8 = smov (!%p240_p9), 32   ;;  %s915_s14 = sshll.u32 (!%p240_p9), %s1153_s28, 3 }
  0x10   : > { %s831_s16 = scalar_lea.hbm (!%p240_p9), %s1363_s7, %s915_s14 }
  0x11   : > { %s835_s22 = sshll.u32 (!%p240_p9), %s831_s16, 4  ;;  %s836_s22 = int_to_ptr.hbm [resolvable:$true] %s835_s22 }
  0x13   : > { %v280_v0 = vld [vmem:[%s1357_s1 + $0x28] sm:$0xff]  ;;  %v279_v1 = vld [vmem:[%s1357_s1 + $0x20] sm:$0xff]  ;;  %v278_v2 = vld [vmem:[%s1357_s1 + $0x18] sm:$0xff]  ;;  %s271_s19 = scalar_select %p270_p10, %s1153_s28, 1  ;;  %vm285_vm0 = vcmask 392192   ;;  %vm317_vm1 = vcmask 261120  }
  0x14   : > { %299 = vmatpush.msra.mxu0 %v280_v0  ;;  %v315_v3 = vld [vmem:[%s1359_s3 + $0x30] sm:$0xff]  ;;  %v316_v4 = vld [vmem:[%s1359_s3 + $0x38] sm:$0xff]  ;;  %v313_v6 = vld [vmem:[%s1359_s3 + $0x20] sm:$0xff]  ;;  %v1081_v26 = vmov 5   ;;  %v1082_v27 = vmov 4   ;;  %v1083_v28 = vmov 1  }
  0x15   : > { %v364_v5 = vld [vmem:[%s1360_s4 + $0x18] sm:$0xff]  ;;  %333 = vmatpush.msra.mxu1 %v315_v3  ;;  %v314_v7 = vld [vmem:[%s1359_s3 + $0x28] sm:$0xff]  ;;  %v363_v8 = vld [vmem:[%s1360_s4 + $0x10] sm:$0xff]  ;;  %s900_s21 = sshll.u32 %s271_s19, 3  ;;  %353 = vmatpush.msra.mxu2 %v316_v4  ;;  %v1084_v31 = vmov 3   ;;  %v1085_v32 = vmov 2  }
  0x16   : > { %300 = vmatpush.msra.mxu0 %v279_v1  ;;  %v277_v9 = vld [vmem:[%s1357_s1 + $0x10] sm:$0xff]  ;;  %377 = vmatpush.msra.mxu3 %v364_v5  ;;  %v276_v10 = vld [vmem:[%s1357_s1 + $0x8] sm:$0xff]  ;;  %s273_s9 = scalar_lea.vmem %s1356_s0, %s900_s21  ;;  %v275_v11 = vld [vmem:[%s1357_s1] sm:$0xff]  ;;  %v1086_v33 = vmov 0   ;;  %v1087_v34 = vmov 7   ;;  %v1088_v35 = vmov 6  }
  0x17   : > { %334 = vmatpush.msra.mxu1 %v313_v6  ;;  %354 = vmatpush.msra.mxu2 %v314_v7  ;;  %v274_v12 = vld [vmem:[%s273_s9] sm:$0xff]  ;;  %v311_v13 = vld [vmem:[%s1359_s3 + $0x10] sm:$0xff]  ;;  %v312_v14 = vld [vmem:[%s1359_s3 + $0x18] sm:$0xff]  ;;  %vm451_vm2 = vcmask 64512   ;;  %s267_s9 = sand.u32 1, %s1071_s25  }
  0x18   : > { %301 = vmatpush.msra.mxu0 %v278_v2  ;;  %378 = vmatpush.msra.mxu3 %v363_v8  ;;  %v362_v15 = vld [vmem:[%s1360_s4 + $0x8] sm:$0xff]  ;;  %v309_v16 = vld [vmem:[%s1359_s3] sm:$0xff]  ;;  %v388_v19 = vld [vmem:[%s1361_s5 + $0x18] sm:$0xff]  ;;  %s899_s13 = sshll.u32 %s267_s9, 3  ;;  %s821_s28 = scalar_lea.sflag [#allocation3], %s267_s9 }
  0x19   : > { %335 = vmatpush.msra.mxu1 %v311_v13  ;;  %355 = vmatpush.msra.mxu2 %v312_v14  ;;  %v310_v17 = vld [vmem:[%s1359_s3 + $0x8] sm:$0xff]  ;;  %v361_v18 = vld [vmem:[%s1360_s4] sm:$0xff]  ;;  %v387_v20 = vld [vmem:[%s1361_s5 + $0x10] sm:$0xff]  ;;  %s269_s20 = scalar_lea.vmem [#allocation2], %s899_s13  ;;  %s1037_s13 = scalar_lea.hbm %s1363_s7, 16 }
  0x1a   : > { %302 = vmatpush.msra.mxu0 %v277_v9  ;;  %379 = vmatpush.msra.mxu3 %v362_v15  ;;  %v386_v21 = vld [vmem:[%s1361_s5 + $0x8] sm:$0xff]  ;;  %v385_v22 = vld [vmem:[%s1361_s5] sm:$0xff]  ;;  %s833_s21 = sshll.u32 %s269_s20, 4  ;;  %s834_s21 = int_to_ptr.vmem [resolvable:$true] %s833_s21 }
  0x1b   : > { %336 = vmatpush.msra.mxu1 %v309_v16  ;;  %356 = vmatpush.msra.mxu2 %v310_v17  ;;  %v983_v23 = vld [vmem:[%s1358_s2] ss:$0 sm:$0xff] }
  0x1c   : > { %303 = vmatpush.msra.mxu0 %v276_v10  ;;  %380 = vmatpush.msra.mxu3 %v361_v18 }
  0x1d   : > { %401 = vmatpush.msrb.mxu1 %v388_v19  ;;  %973 = vset.pattern.permute.xlu2 %v1081_v26 }
  0x1e   : > { %304 = vmatpush.msra.mxu0 %v275_v11  ;;  %971 = vset.pattern.permute.xlu1 %v1082_v27 }
  0x1f   : > { %901 = vmatmul.msk.f32.vlgmr.msra.gmra.mxu0 %vm285_vm0, %v274_v12  ;;  %402 = vmatpush.msrb.mxu1 %v387_v20 }
  0x20   : > { %969 = vset.pattern.permute.xlu0 %v1083_v28 }
  0x21   : > { %403 = vmatpush.msrb.mxu1 %v386_v21 }
  0x23   : > { %404 = vmatpush.msrb.mxu1 %v385_v22 }
  0x9c   : > { %v306_v24 = vpop.f32.mrf.mxu0 }
  0x9d   : > { %v307_v25 = vadd.f32 %v983_v23, %v306_v24 }
  0x9f   : > { %902 = vmatmul.msk.f32.vlgmr.msra.gmra.mxu1 %vm317_vm1, %v307_v25  ;;  %903 = vmatmul.msk.f32.vlgmr.msra.gmra.mxu2 %vm317_vm1, %v307_v25 }
  0xa0   : > { %904 = vmatmul.msk.f32.vlgmr.msra.gmra.mxu3 %vm317_vm1, %v307_v25 }
  0xa7   : > { %905 = vmatmul.msk.f32.vlgmr.msrb.gmra.mxu1 %vm317_vm1, %v307_v25 }
 0x11c   : > { %v1258_v29 = vpop.f32.mrf.mxu1 }
 0x11d   : > { %528 = vmatpush.msrb.mxu3 %v1258_v29 }
 0x122   : > { %v1276_v5 = vpop.f32.mrf.mxu2 }
 0x123   : > { %v382_v36 = vpop.f32.mrf.mxu3  ;;  %v977_v6 = vpack.i.bf16 %v1276_v5, %v1258_v29 }
 0x124   : > { %v406_v30 = vpop.f32.mrf.mxu1 }
 0x125   : > { %672 = vperm.xlu2 %973, %v406_v30   ;;  %628 = vperm.xlu1 %971, %v406_v30  }
 0x126   : > { %464 = vperm.xlu0 %969, %v406_v30  }
 0x12d   : > { %974 = vset.pattern.permute.xlu2 %v1084_v31  ;;  %972 = vset.pattern.permute.xlu1 %v1085_v32 }
 0x12e   : > { %970 = vset.pattern.permute.xlu0 %v1086_v33  ;;  %581 = vperm.xlu2 %974, %v406_v30  }
 0x12f   : > { %534 = vperm.xlu1 %972, %v406_v30   ;;  %443 = vperm.xlu0 %970, %v406_v30  }
 0x136   : > { %976 = vset.pattern.permute.xlu2 %v1087_v34 }
 0x137   : > { %975 = vset.pattern.permute.xlu1 %v1088_v35  ;;  %767 = vperm.xlu2 %976, %v406_v30  }
 0x138   : > { %720 = vperm.xlu1 %975, %v406_v30  }
 0x151   : > { %409 = vxpose.xlu0.b32.start.end [1/1] (short) (narrow) %v382_v36, 8 }
 0x17f   : > { %v673_v46 = vpop.permute.xlu2 %672 }
 0x188   : > { %v582_v11 = vpop.permute.xlu2 %581 }
 0x191   : > { %v768_v17 = vpop.permute.xlu2 %767 }
 0x197   : > { %v629_v38 = vpop.permute.xlu1 %628 }
 0x198   : > { %v465_v37 = vpop.permute.xlu0 %464 }
 0x1a1   : > { %v444_v39 = vpop.permute.xlu0 %443  ;;  %v535_v45 = vpop.permute.xlu1 %534 }
 0x1aa   : > { %v721_v62 = vpop.permute.xlu1 %720 }
 0x1b8   : > { %982 = vset.pattern.permute.xlu0 %v1087_v34 }
 0x1f5   : > { %v1261_v40 = vpop.trf.xlu0 }
 0x1f6   : > { %v631_v41 = vperm.slane %v1261_v40, 4  ;;  %v467_v42 = vperm.slane %v1261_v40, 1  ;;  %v446_v43 = vperm.slane %v1261_v40, 0  ;;  %v675_v44 = vperm.slane %v1261_v40, 5 }
 0x1f7   : > { %v723_v61 = vperm.slane %v1261_v40, 6  ;;  %v537_v7 = vperm.slane %v1261_v40, 2  ;;  %v584_v10 = vperm.slane %v1261_v40, 3  ;;  %v770_v16 = vperm.slane %v1261_v40, 7 }
 0x1f8   : > { %v632_v47 = vadd.f32 %v631_v41, %v629_v38  ;;  %v468_v48 = vadd.f32 %v467_v42, %v465_v37  ;;  %v447_v49 = vadd.f32 %v446_v43, %v444_v39  ;;  %v676_v50 = vadd.f32 %v675_v44, %v673_v46 }
 0x1f9   : > { %v724_v0 = vadd.f32 %v723_v61, %v721_v62  ;;  %v538_v8 = vadd.f32 %v537_v7, %v535_v45  ;;  %v585_v13 = vadd.f32 %v584_v10, %v582_v11  ;;  %v771_v19 = vadd.f32 %v770_v16, %v768_v17 }
 0x1fa   : > { %vm633_vm3 = vcmp.ge.f32.partialorder %v632_v47, 0.0  ;;  %v634_v51 = vmul.f32 0.2, %v632_v47  ;;  %vm469_vm4 = vcmp.ge.f32.partialorder %v468_v48, 0.0  ;;  %v470_v52 = vmul.f32 0.2, %v468_v48 }
 0x1fb   : > { %vm448_vm5 = vcmp.ge.f32.partialorder %v447_v49, 0.0  ;;  %v449_v53 = vmul.f32 0.2, %v447_v49  ;;  %v678_v60 = vmul.f32 0.2, %v676_v50  ;;  %vm677_vm6 = vcmp.ge.f32.partialorder %v676_v50, 0.0 }
 0x1fc   : > { %v635_v54 = vsel %vm633_vm3, %v632_v47, %v634_v51  ;;  %v471_v55 = vsel %vm469_vm4, %v468_v48, %v470_v52  ;;  %v726_v2 = vmul.f32 0.2, %v724_v0  ;;  %vm725_vm7 = vcmp.ge.f32.partialorder %v724_v0, 0.0 }
 0x1fd   : > { %v636_v56 = vsel %vm451_vm2, %v635_v54, -inf  ;;  %v472_v57 = vsel %vm451_vm2, %v471_v55, -inf  ;;  %v450_v58 = vsel %vm448_vm5, %v447_v49, %v449_v53  ;;  %v1271_v63 = vsel %vm677_vm6, %v676_v50, %v678_v60 }
 0x1fe   : > { %637 = vmax.xlane.f32.xlu0 %v636_v56  ;;  %473 = vmax.xlane.f32.xlu1 %v472_v57  ;;  %v452_v59 = vsel %vm451_vm2, %v450_v58, -inf  ;;  %v680_v1 = vsel %vm451_vm2, %v1271_v63, -inf  ;;  %v727_v3 = vsel %vm725_vm7, %v724_v0, %v726_v2  ;;  %v540_v9 = vmul.f32 0.2, %v538_v8 }
 0x1ff   : > { %453 = vmax.xlane.f32.xlu2 %v452_v59  ;;  %v728_v4 = vsel %vm451_vm2, %v727_v3, -inf  ;;  %vm539_vm8 = vcmp.ge.f32.partialorder %v538_v8, 0.0  ;;  %v587_v15 = vmul.f32 0.2, %v585_v13  ;;  %vm586_vm9 = vcmp.ge.f32.partialorder %v585_v13, 0.0 }
 0x200   : > { %v541_v12 = vsel %vm539_vm8, %v538_v8, %v540_v9  ;;  %v773_v21 = vmul.f32 0.2, %v771_v19  ;;  %vm772_vm10 = vcmp.ge.f32.partialorder %v771_v19, 0.0 }
 0x201   : > { %v542_v14 = vsel %vm451_vm2, %v541_v12, -inf  ;;  %v1286_v18 = vsel %vm586_vm9, %v585_v13, %v587_v15 }
 0x202   : > { %v589_v20 = vsel %vm451_vm2, %v1286_v18, -inf  ;;  %v1290_v22 = vsel %vm772_vm10, %v771_v19, %v773_v21 }
 0x203   : > { %v775_v23 = vsel %vm451_vm2, %v1290_v22, -inf }
 0x206   : > { %681 = vmax.xlane.f32.xlu1 %v680_v1 }
 0x20e   : > { %729 = vmax.xlane.f32.xlu1 %v728_v4 }
 0x212   : > { %739 = vrot.lane.b32.xlu0 %v1276_v5, %s1089_s23 }
 0x217   : > { %978 = vrot.lane.b32.xlu2 %v977_v6, %s1090_s29 }
 0x227   : > { %553 = vrot.lane.b32.xlu1 %v1258_v29, %s1089_s23  ;;  %s1031_s23 = sshra.s32 %s836_s22, 4  ;;  %s1032_s23 = int_to_ptr.hbm [resolvable:$true] %s1031_s23 }
 0x228   : > { %s1033_s29 = scalar_lea.hbm %s1032_s23, 8  ;;  %p1038_p0 = scmp.lt.s32.totalorder %s1032_s23, %s1363_s7 }
 0x229   : > { %p1034_p11 = scmp.ne.s32.totalorder %s1032_s23, %s1033_s29  ;;  %p1039_p1 = scmp.lt.s32.totalorder %s1037_s13, %s1033_s29 }
 0x22b   : > { %p1035_p12 = pnand %p1034_p11, %p1170_p5  ;;  %p1040_p2 = por %p1039_p1, %p1038_p0 }
 0x22d   : > { %p1036_p13 = pneg %p1035_p12 }
 0x22f   : > { %p1041_p3 = pnand %p1040_p2, %p1036_p13 }
 0x240   : > { %543 = vmax.xlane.f32.xlu2 %v542_v14 }
 0x248   : > { %590 = vmax.xlane.f32.xlu2 %v589_v20 }
 0x250   : > { %776 = vmax.xlane.f32.xlu2 %v775_v23 }
 0x271   : > { %v474_v24 = vpop.xlane.xlu1 %473  ;;  %v638_v25 = vpop.xlane.xlu0 %637 }
 0x272   : > { %v475_v26 = vsub.f32 %v471_v55, %v474_v24  ;;  %v454_v27 = vpop.xlane.xlu2 %453  ;;  %v639_v31 = vsub.f32 %v635_v54, %v638_v25 }
 0x273   : > { %v455_v28 = vsub.f32 %v450_v58, %v454_v27 }
 0x274   : > { %v476_v30 = vmul.f32 1.442695, %v475_v26  ;;  %v640_v33 = vmul.f32 1.442695, %v639_v31 }
 0x275   : > { %v456_v32 = vmul.f32 1.442695, %v455_v28 }
 0x276   : > { %985 = vpow2.f32 %v476_v30 }
 0x277   : > { %987 = vpow2.f32 %v456_v32 }
 0x278   : > { %989 = vpow2.f32 %v640_v33 }
 0x279   : > { %v682_v34 = vpop.xlane.xlu1 %681 }
 0x27a   : > { %v979_v35 = vpop.permute.xlu2 %978  ;;  %v683_v53 = vsub.f32 %v1271_v63, %v682_v34 }
 0x27b   : > { %v981_v36 = vunpack.i.h.bf16 %v979_v35  ;;  %v980_v37 = vunpack.i.l.bf16 %v979_v35 }
 0x27c   : > { %v986_v38 = vpop.eup %985  ;;  %v684_v55 = vmul.f32 1.442695, %v683_v53 }
 0x27d   : > { %505 = vmatpush.msrb.mxu2 %v980_v37  ;;  %713 = vmatpush.msra.mxu3 %v981_v36  ;;  %v988_v39 = vpop.eup %987  ;;  %v478_v40 = vsel %vm451_vm2, %v986_v38, 0.0 }
 0x27e   : > { %479 = vadd.xlane.f32.xlu1 %v478_v40  ;;  %v458_v41 = vsel %vm451_vm2, %v988_v39, 0.0  ;;  %v990_v44 = vpop.eup %989 }
 0x27f   : > { %665 = vmatpush.msra.mxu2 %v1276_v5  ;;  %459 = vadd.xlane.f32.xlu2 %v458_v41  ;;  %v642_v46 = vsel %vm451_vm2, %v990_v44, 0.0 }
 0x281   : > { %v730_v42 = vpop.xlane.xlu1 %729 }
 0x282   : > { %v731_v43 = vsub.f32 %v727_v3, %v730_v42 }
 0x284   : > { %v732_v45 = vmul.f32 1.442695, %v731_v43  ;;  %v740_v50 = vpop.permute.xlu0 %739 }
 0x286   : > { %991 = vpow2.f32 %v732_v45  ;;  %643 = vadd.xlane.f32.xlu1 %v642_v46 }
 0x28c   : > { %v1298_v47 = vpop.eup %991 }
 0x28d   : > { %v734_v48 = vsel %vm451_vm2, %v1298_v47, 0.0 }
 0x28e   : > { %735 = vadd.xlane.f32.xlu2 %v734_v48 }
 0x299   : > { %v554_v49 = vpop.permute.xlu1 %553 }
 0x29a   : > { %574 = vmatpush.msrb.mxu0 %v554_v49 }
 0x29c   : > { %760 = vmatpush.msra.mxu0 %v740_v50 }
 0x2a6   : > { %600 = vrot.lane.b32.xlu2 %v1258_v29, %s1091_s8 }
 0x2ae   : > { %786 = vrot.lane.b32.xlu2 %v1276_v5, %s1091_s8 }
 0x2b3   : > { %v544_v51 = vpop.xlane.xlu2 %543 }
 0x2b4   : > { %v545_v52 = vsub.f32 %v541_v12, %v544_v51 }
 0x2b6   : > { %v546_v54 = vmul.f32 1.442695, %v545_v52 }
 0x2b8   : > { %993 = vpow2.f32 %v546_v54 }
 0x2b9   : > { %995 = vpow2.f32 %v684_v55 }
 0x2bb   : > { %v591_v56 = vpop.xlane.xlu2 %590 }
 0x2bc   : > { %v592_v58 = vsub.f32 %v1286_v18, %v591_v56 }
 0x2be   : > { %v994_v57 = vpop.eup %993  ;;  %v593_v60 = vmul.f32 1.442695, %v592_v58 }
 0x2bf   : > { %v548_v59 = vsel %vm451_vm2, %v994_v57, 0.0  ;;  %v996_v29 = vpop.eup %995 }
 0x2c0   : > { %549 = vadd.xlane.f32.xlu1 %v548_v59  ;;  %997 = vpow2.f32 %v593_v60  ;;  %v686_v0 = vsel %vm451_vm2, %v996_v29, 0.0 }
 0x2c3   : > { %v777_v61 = vpop.xlane.xlu2 %776 }
 0x2c4   : > { %v778_v62 = vsub.f32 %v1290_v22, %v777_v61 }
 0x2c6   : > { %v779_v63 = vmul.f32 1.442695, %v778_v62  ;;  %v998_v1 = vpop.eup %997 }
 0x2c7   : > { %v595_v2 = vsel %vm451_vm2, %v998_v1, 0.0 }
 0x2c8   : > { %687 = vadd.xlane.f32.xlu1 %v686_v0  ;;  %999 = vpow2.f32 %v779_v63 }
 0x2ce   : > { %v1000_v3 = vpop.eup %999 }
 0x2cf   : > { %v781_v4 = vsel %vm451_vm2, %v1000_v3, 0.0 }
 0x2d0   : > { %596 = vadd.xlane.f32.xlu1 %v595_v2 }
 0x2d8   : > { %782 = vadd.xlane.f32.xlu1 %v781_v4 }
 0x2f1   : > { %v480_v5 = vpop.xlane.xlu1 %479 }
 0x2f2   : > { %1001 = vrcp.f32 %v480_v5  ;;  %v460_v6 = vpop.xlane.xlu2 %459 }
 0x2f3   : > { %1003 = vrcp.f32 %v460_v6 }
 0x2f8   : > { %v1002_v7 = vpop.eup %1001 }
 0x2f9   : > { %v1004_v8 = vpop.eup %1003  ;;  %v644_v9 = vpop.xlane.xlu1 %643  ;;  %v482_v10 = vmul.f32 %v1002_v7, %v986_v38 }
 0x2fa   : > { %1005 = vrcp.f32 %v644_v9  ;;  %v462_v11 = vmul.f32 %v1004_v8, %v988_v39 }
 0x2fb   : > { %906 = vmatmul.msk.f32.vlgmr.msrb.gmra.mxu2 %vm451_vm2, %v482_v10 }
 0x2fc   : > { %907 = vmatmul.msk.f32.vlgmr.msrb.gmra.mxu3 %vm451_vm2, %v462_v11 }
 0x300   : > { %v1006_v12 = vpop.eup %1005 }
 0x301   : > { %v736_v13 = vpop.xlane.xlu2 %735  ;;  %v646_v14 = vmul.f32 %v1006_v12, %v990_v44 }
 0x303   : > { %910 = vmatmul.msk.f32.vlgmr.msra.gmra.mxu2 %vm451_vm2, %v646_v14 }
 0x309   : > { %v601_v15 = vpop.permute.xlu2 %600 }
 0x30a   : > { %621 = vmatpush.msra.mxu1 %v601_v15 }
 0x311   : > { %v787_v16 = vpop.permute.xlu2 %786 }
 0x312   : > { %807 = vmatpush.msrb.mxu1 %v787_v16 }
 0x333   : > { %v550_v17 = vpop.xlane.xlu1 %549 }
 0x334   : > { %1007 = vrcp.f32 %v550_v17 }
 0x335   : > { %1009 = vrcp.f32 %v736_v13 }
 0x33a   : > { %v1008_v18 = vpop.eup %1007 }
 0x33b   : > { %v688_v19 = vpop.xlane.xlu1 %687  ;;  %v552_v20 = vmul.f32 %v1008_v18, %v994_v57  ;;  %v1010_v21 = vpop.eup %1009 }
 0x33c   : > { %1011 = vrcp.f32 %v688_v19  ;;  %v738_v23 = vmul.f32 %v1010_v21, %v1298_v47  ;;  %v984_v47 = vld [vmem:[%s1362_s6] ss:$0 sm:$0xff] }
 0x33d   : > { %908 = vmatmul.msk.f32.vlgmr.msrb.gmra.mxu0 %vm451_vm2, %v552_v20 }
 0x342   : > { %v1012_v22 = vpop.eup %1011 }
 0x343   : > { %v690_v24 = vmul.f32 %v1012_v22, %v996_v29  ;;  %v597_v25 = vpop.xlane.xlu1 %596 }
 0x344   : > { %1013 = vrcp.f32 %v597_v25 }
 0x345   : > { %911 = vmatmul.msk.f32.vlgmr.msra.gmra.mxu3 %vm451_vm2, %v690_v24  ;;  %912 = vmatmul.msk.f32.vlgmr.msra.gmra.mxu0 %vm451_vm2, %v738_v23 }
 0x34a   : > { %v1014_v26 = vpop.eup %1013 }
 0x34b   : > { %v599_v27 = vmul.f32 %v1014_v26, %v998_v1  ;;  %v783_v28 = vpop.xlane.xlu1 %782 }
 0x34c   : > { %1015 = vrcp.f32 %v783_v28 }
 0x34d   : > { %909 = vmatmul.msk.f32.vlgmr.msra.gmra.mxu1 %vm451_vm2, %v599_v27 }
 0x352   : > { %v1016_v30 = vpop.eup %1015 }
 0x353   : > { %v785_v31 = vmul.f32 %v1016_v30, %v1000_v3 }
 0x355   : > { %913 = vmatmul.msk.f32.vlgmr.msrb.gmra.mxu1 %vm451_vm2, %v785_v31 }
 0x37e   : > { %v507_v32 = vpop.f32.mrf.mxu2 }
 0x37f   : > { %v530_v33 = vpop.f32.mrf.mxu3 }
 0x380   : > { %v531_v35 = vadd.f32 %v530_v33, %v507_v32 }
 0x386   : > { %v667_v39 = vpop.f32.mrf.mxu2 }
 0x3ba   : > { %v576_v34 = vpop.f32.mrf.mxu0 }
 0x3bb   : > { %v579_v36 = vadd.f32 %v576_v34, %v531_v35 }
 0x3c2   : > { %v762_v43 = vpop.f32.mrf.mxu0 }
 0x3c8   : > { %v715_v41 = vpop.f32.mrf.mxu3 }
 0x3ca   : > { %v623_v37 = vpop.f32.mrf.mxu1 }
 0x3cb   : > { %v626_v38 = vadd.f32 %v623_v37, %v579_v36 }
 0x3cd   : > { %v670_v40 = vadd.f32 %v667_v39, %v626_v38 }
 0x3cf   : > { %v718_v42 = vadd.f32 %v715_v41, %v670_v40 }
 0x3d1   : > { %v765_v44 = vadd.f32 %v762_v43, %v718_v42 }
 0x3d2   : > { %v809_v45 = vpop.f32.mrf.mxu1 }
 0x3d3   : > { %v812_v46 = vadd.f32 %v809_v45, %v765_v44 }
 0x3d5   : > { %v813_v48 = vmul.f32 0.125, %v812_v46 }
 0x3d7   : > { %v818_v49 = vadd.f32 %v984_v47, %v813_v48 }
 0x3d9   : > { %819 = vst.msk [vmem:[%s269_s20] sm:$0xff] %vm317_vm1, %v818_v49 }
 0x3da   : > { %1044 = shalt.err (!%p1041_p3)
}
 0x3db   : > { %918 = dma.vmem_to_hbm [thread:$0]  (%p1170_p5), %s834_s21, 128, %s836_s22, %s821_s28  }
 0x3dc PF: > { %p924_p4 = scmp.ge.s32.totalorder %s1079_s27, 2  ;;  %s847_s9 = sand.u32 1, %s1067_s24  }
 0x3dd   : > { %s848_s16 = scalar_lea.sflag [#allocation3], %s847_s9 }
 0x3de   : > { %p921_p7 = pnand %p924_p4, %p1174_p6 }
 0x3e0   : > { %p922_p8 = pneg %p921_p7 }
 0x3e2   : > { %1062 = dma.done.wait (%p922_p8), %s848_s16, 128  }
 0x3e3   : > { %1064 = vsyncadd (%p922_p8), %s848_s16, 4294967168  ;;  %p17_p9 = scmp.ge.s32.totalorder %s1157_s30, 4   ;;  %s1366_s24 = smov %s1071_s25 }
 0x3e4   : > { %s1367_s25 = smov %s1075_s26  ;;  %s1368_s26 = smov %s1168_s10 }
 0x3e5   : > { %s1369_s27 = smov %s1157_s30  ;;  %19 = sbr.rel (!%p17_p9) target bundleno = 3 (0x3), region = 83 }
 0x3ea   :  { %854 = vsyncpa [#allocation3], 1 }
 0x3eb   :  { %856 = vsyncpa [#allocation3 + $0x1], 1 }

</bundles_post_ra>
